<compile_context>
chip_gen: v7x
topology: tpu7x:2x2x1
jax: 0.10.0
libtpu: 0.0.40
codegen_flags: <defaults>
</compile_context>

<pallas_src>
import functools

import jax
import jax.numpy as jnp
from jax.experimental import pallas as pl
from jax.experimental.pallas import tpu as pltpu

# torch.tensor([6, 5, 8, 7, 4, 1, 2, 0, 3]) — compile-time constant permutation.
_PERM = (6, 5, 8, 7, 4, 1, 2, 0, 3)


def _cat_square_permute_kernel(x1_ref, x2_ref, x3_ref, o_ref, *, n1, n2, perm):
    """Fused out[dst] = (cat(x1, x2, x3)[perm[dst]]) ** 2 on one feature tile.

    Refs are (rows, TILE_F) VMEM blocks with a lane-dense last dim.  The perm and
    the concat row-partition are static, so the gather unrolls into 9 independent
    (read row -> square -> store row) sequences: lane-dense loads/stores, no
    cross-sublane shuffle work.
    """
    for dst, src in enumerate(perm):  # static Python loop — fully unrolled
        if src < n1:
            row = x1_ref[src:src + 1, :]
        elif src < n1 + n2:
            r = src - n1
            row = x2_ref[r:r + 1, :]
        else:
            r = src - n1 - n2
            row = x3_ref[r:r + 1, :]
        o_ref[dst:dst + 1, :] = row * row


def cat_square_permute(x1, x2, x3, perm=_PERM, max_tile_f=2048):
    """out = (cat([x1, x2, x3], 0) ** 2)[perm], fused in one Pallas call."""
    n1, n2, n3 = x1.shape[0], x2.shape[0], x3.shape[0]
    C, H, W = x1.shape[1:]
    assert x2.shape[1:] == (C, H, W) and x3.shape[1:] == (C, H, W)
    feat = C * H * W
    n = n1 + n2 + n3
    perm = tuple(int(p) for p in perm)
    assert len(perm) == n, "permutation length must match total batch"
    assert all(0 <= p < n for p in perm), "permutation entry out of range"

    # Largest lane-aligned tile (multiple of 128, <= max_tile_f) dividing F;
    # fall back to the whole feature axis (full-array block is always legal).
    tile_f = feat
    for cand in (max_tile_f, 2048, 1024, 512, 256, 128):
        if 0 < cand <= feat and feat % cand == 0:
            tile_f = cand
            break
    grid = (feat // tile_f,)

    # Lane-dense layout plumbing (free reshape in plain JAX).
    x1f = x1.reshape(n1, feat)
    x2f = x2.reshape(n2, feat)
    x3f = x3.reshape(n3, feat)

    kernel = functools.partial(
        _cat_square_permute_kernel, n1=n1, n2=n2, perm=perm)

    itemsize = jnp.dtype(x1.dtype).itemsize
    cost = pl.CostEstimate(
        flops=n * feat,                       # one multiply per output element
        transcendentals=0,
        bytes_accessed=2 * n * feat * itemsize,
    )

    outf = pl.pallas_call(
        kernel,
        out_shape=jax.ShapeDtypeStruct((n, feat), x1.dtype),
        grid=grid,
        in_specs=[
            pl.BlockSpec((n1, tile_f), lambda f: (0, f)),
            pl.BlockSpec((n2, tile_f), lambda f: (0, f)),
            pl.BlockSpec((n3, tile_f), lambda f: (0, f)),
        ],
        out_specs=pl.BlockSpec((n, tile_f), lambda f: (0, f)),
        compiler_params=pltpu.CompilerParams(
            dimension_semantics=("parallel",)),
        cost_estimate=cost,
    )(x1f, x2f, x3f)
    return outf.reshape(n, C, H, W)


def init_params(key):
    # Conv2d(3, 8, kernel_size=1, stride=1, padding=1) from __init__.
    # Never used in forward; initialized deterministically for completeness.
    kw, _ = jax.random.split(key)
    return {
        "conv_w": jax.random.normal(kw, (8, 3, 1, 1), jnp.float32) * 0.1,
        "conv_b": jnp.zeros((8,), jnp.float32),
    }


def model_forward(params, x1, x2, x3):
    # t2 = t1[:, 0:INT64_MAX] is an identity slice — no effect on the output.
    # TODO(synk): t3/t4 in the reference forward index a 4-D tensor with 5 indices
    # (IndexError in PyTorch) and never feed the returned value; dead code, omitted.
    # concat + square + index_select are all fused into the single Pallas kernel.
    return cat_square_permute(x1, x2, x3, _PERM)


if __name__ == "__main__":
    key = jax.random.PRNGKey(0)
    k1, k2, k3, kp = jax.random.split(key, 4)

    # Shapes from the module spec: batches 2/4/3 (perm needs N=9), channels=3,
    # spatial 64x64 -> feature dim F = 12288 = 96*128 lanes (6 tiles of 2048).
    C, H, W = 3, 64, 64
    x1 = jax.random.normal(k1, (2, C, H, W), jnp.float32)
    x2 = jax.random.normal(k2, (4, C, H, W), jnp.float32)
    x3 = jax.random.normal(k3, (3, C, H, W), jnp.float32)

    params = init_params(kp)

    out = model_forward(params, x1, x2, x3)
    out = jax.block_until_ready(out)

    # Pure-JAX reference check.
    t1 = jnp.concatenate([x1, x2, x3], axis=0)
    perm = jnp.array(_PERM, dtype=jnp.int32)
    ref = (t1 * t1)[perm]

    assert out.shape == (9, C, H, W), out.shape
    assert out.dtype == jnp.float32
    assert jnp.allclose(out, ref, atol=1e-6, rtol=1e-6), "mismatch vs reference"

    print("KERNEL_OK")
</pallas_src>

<mosaic_0001>
module attributes {stable_mosaic.version = 11 : i64} {
  func.func @_cat_square_permute_kernel(%arg0: i32, %arg1: memref<2x2048xf32, #tpu.memory_space<vmem>>, %arg2: memref<4x2048xf32, #tpu.memory_space<vmem>>, %arg3: memref<3x2048xf32, #tpu.memory_space<vmem>>, %arg4: memref<9x2048xf32, #tpu.memory_space<vmem>>) attributes {dimension_semantics = [#tpu.dimension_semantics<parallel>], iteration_bounds = array<i64: 6>, scalar_prefetch = 0 : i64, scratch_operands = 0 : i64, tpu.core_type = #tpu.core_type<tc>, window_params = [{transform_indices = @transform_0, window_bounds = array<i64: 2, 2048>}, {transform_indices = @transform_1, window_bounds = array<i64: 4, 2048>}, {transform_indices = @transform_2, window_bounds = array<i64: 3, 2048>}, {transform_indices = @transform_3, window_bounds = array<i64: 9, 2048>}]} {
    %c0 = arith.constant 0 : index
    %c0_0 = arith.constant 0 : index
    %0 = vector.load %arg3[%c0, %c0_0] : memref<3x2048xf32, #tpu.memory_space<vmem>>, vector<1x2048xf32>
    %1 = arith.mulf %0, %0 : vector<1x2048xf32>
    %c0_1 = arith.constant 0 : index
    %c0_2 = arith.constant 0 : index
    %2 = vector.load %arg4[%c0_1, %c0_2] : memref<9x2048xf32, #tpu.memory_space<vmem>>, vector<1x2048xf32>
    tpu.vector_store %arg4[%c0_1, %c0_2], %1 {strides = array<i32>} : memref<9x2048xf32, #tpu.memory_space<vmem>>, vector<1x2048xf32>,
    %c3 = arith.constant 3 : index
    %c0_3 = arith.constant 0 : index
    %3 = vector.load %arg2[%c3, %c0_3] : memref<4x2048xf32, #tpu.memory_space<vmem>>, vector<1x2048xf32>
    %4 = arith.mulf %3, %3 : vector<1x2048xf32>
    %c1 = arith.constant 1 : index
    %c0_4 = arith.constant 0 : index
    %5 = vector.load %arg4[%c1, %c0_4] : memref<9x2048xf32, #tpu.memory_space<vmem>>, vector<1x2048xf32>
    tpu.vector_store %arg4[%c1, %c0_4], %4 {strides = array<i32>} : memref<9x2048xf32, #tpu.memory_space<vmem>>, vector<1x2048xf32>,
    %c2 = arith.constant 2 : index
    %c0_5 = arith.constant 0 : index
    %6 = vector.load %arg3[%c2, %c0_5] : memref<3x2048xf32, #tpu.memory_space<vmem>>, vector<1x2048xf32>
    %7 = arith.mulf %6, %6 : vector<1x2048xf32>
    %c2_6 = arith.constant 2 : index
    %c0_7 = arith.constant 0 : index
    %8 = vector.load %arg4[%c2_6, %c0_7] : memref<9x2048xf32, #tpu.memory_space<vmem>>, vector<1x2048xf32>
    tpu.vector_store %arg4[%c2_6, %c0_7], %7 {strides = array<i32>} : memref<9x2048xf32, #tpu.memory_space<vmem>>, vector<1x2048xf32>,
    %c1_8 = arith.constant 1 : index
    %c0_9 = arith.constant 0 : index
    %9 = vector.load %arg3[%c1_8, %c0_9] : memref<3x2048xf32, #tpu.memory_space<vmem>>, vector<1x2048xf32>
    %10 = arith.mulf %9, %9 : vector<1x2048xf32>
    %c3_10 = arith.constant 3 : index
    %c0_11 = arith.constant 0 : index
    %11 = vector.load %arg4[%c3_10, %c0_11] : memref<9x2048xf32, #tpu.memory_space<vmem>>, vector<1x2048xf32>
    tpu.vector_store %arg4[%c3_10, %c0_11], %10 {strides = array<i32>} : memref<9x2048xf32, #tpu.memory_space<vmem>>, vector<1x2048xf32>,
    %c2_12 = arith.constant 2 : index
    %c0_13 = arith.constant 0 : index
    %12 = vector.load %arg2[%c2_12, %c0_13] : memref<4x2048xf32, #tpu.memory_space<vmem>>, vector<1x2048xf32>
    %13 = arith.mulf %12, %12 : vector<1x2048xf32>
    %c4 = arith.constant 4 : index
    %c0_14 = arith.constant 0 : index
    %14 = vector.load %arg4[%c4, %c0_14] : memref<9x2048xf32, #tpu.memory_space<vmem>>, vector<1x2048xf32>
    tpu.vector_store %arg4[%c4, %c0_14], %13 {strides = array<i32>} : memref<9x2048xf32, #tpu.memory_space<vmem>>, vector<1x2048xf32>,
    %c1_15 = arith.constant 1 : index
    %c0_16 = arith.constant 0 : index
    %15 = vector.load %arg1[%c1_15, %c0_16] : memref<2x2048xf32, #tpu.memory_space<vmem>>, vector<1x2048xf32>
    %16 = arith.mulf %15, %15 : vector<1x2048xf32>
    %c5 = arith.constant 5 : index
    %c0_17 = arith.constant 0 : index
    %17 = vector.load %arg4[%c5, %c0_17] : memref<9x2048xf32, #tpu.memory_space<vmem>>, vector<1x2048xf32>
    tpu.vector_store %arg4[%c5, %c0_17], %16 {strides = array<i32>} : memref<9x2048xf32, #tpu.memory_space<vmem>>, vector<1x2048xf32>,
    %c0_18 = arith.constant 0 : index
    %c0_19 = arith.constant 0 : index
    %18 = vector.load %arg2[%c0_18, %c0_19] : memref<4x2048xf32, #tpu.memory_space<vmem>>, vector<1x2048xf32>
    %19 = arith.mulf %18, %18 : vector<1x2048xf32>
    %c6 = arith.constant 6 : index
    %c0_20 = arith.constant 0 : index
    %20 = vector.load %arg4[%c6, %c0_20] : memref<9x2048xf32, #tpu.memory_space<vmem>>, vector<1x2048xf32>
    tpu.vector_store %arg4[%c6, %c0_20], %19 {strides = array<i32>} : memref<9x2048xf32, #tpu.memory_space<vmem>>, vector<1x2048xf32>,
    %c0_21 = arith.constant 0 : index
    %c0_22 = arith.constant 0 : index
    %21 = vector.load %arg1[%c0_21, %c0_22] : memref<2x2048xf32, #tpu.memory_space<vmem>>, vector<1x2048xf32>
    %22 = arith.mulf %21, %21 : vector<1x2048xf32>
    %c7 = arith.constant 7 : index
    %c0_23 = arith.constant 0 : index
    %23 = vector.load %arg4[%c7, %c0_23] : memref<9x2048xf32, #tpu.memory_space<vmem>>, vector<1x2048xf32>
    tpu.vector_store %arg4[%c7, %c0_23], %22 {strides = array<i32>} : memref<9x2048xf32, #tpu.memory_space<vmem>>, vector<1x2048xf32>,
    %c1_24 = arith.constant 1 : index
    %c0_25 = arith.constant 0 : index
    %24 = vector.load %arg2[%c1_24, %c0_25] : memref<4x2048xf32, #tpu.memory_space<vmem>>, vector<1x2048xf32>
    %25 = arith.mulf %24, %24 : vector<1x2048xf32>
    %c8 = arith.constant 8 : index
    %c0_26 = arith.constant 0 : index
    %26 = vector.load %arg4[%c8, %c0_26] : memref<9x2048xf32, #tpu.memory_space<vmem>>, vector<1x2048xf32>
    tpu.vector_store %arg4[%c8, %c0_26], %25 {strides = array<i32>} : memref<9x2048xf32, #tpu.memory_space<vmem>>, vector<1x2048xf32>,
    return
  }
  func.func @transform_0(%arg0: i32) -> (i32, i32) {
    %c0_i32 = arith.constant 0 : i32
    %c0_i32_0 = arith.constant 0 : i32
    return %c0_i32, %arg0 : i32, i32
  }
  func.func @transform_1(%arg0: i32) -> (i32, i32) {
    %c0_i32 = arith.constant 0 : i32
    %c0_i32_0 = arith.constant 0 : i32
    return %c0_i32, %arg0 : i32, i32
  }
  func.func @transform_2(%arg0: i32) -> (i32, i32) {
    %c0_i32 = arith.constant 0 : i32
    %c0_i32_0 = arith.constant 0 : i32
    return %c0_i32, %arg0 : i32, i32
  }
  func.func @transform_3(%arg0: i32) -> (i32, i32) {
    %c0_i32 = arith.constant 0 : i32
    %c0_i32_0 = arith.constant 0 : i32
    return %c0_i32, %arg0 : i32, i32
  }
}

</mosaic_0001>

<bundles_post_ra>
// kernel: tpu_custom_call.1
= control target key start
LH: loop header
LB: loop body
LE: loop exit
PB: predicated region body
PF: predicated region fallthrough
CT: control target
= control target key end

     0   :  { %s1120_s0 = inlined_call_operand.hbm [shape: f32[2,12288], index: 0, kind: input, shape index: {}]   ;;  %s1121_s1 = inlined_call_operand.hbm [shape: f32[4,12288], index: 1, kind: input, shape index: {}]   ;;  %s1122_s2 = inlined_call_operand.hbm [shape: f32[3,12288], index: 2, kind: input, shape index: {}]   ;;  %s1123_s3 = inlined_call_operand.hbm [shape: f32[9,12288], index: 3, kind: output, shape index: {}]  }
   0x1   :  { %1127 = sst [smem:[#allocation13_spill]] %s1121_s1 }
   0x2   :  { %8 = vsyncpa [#allocation3], 0 }
   0x3   :  { %10 = vsyncpa [#allocation3 + $0x1], 0 }
   0x4   :  { %11 = vsyncpa [#allocation6], 0 }
   0x5   :  { %13 = vsyncpa [#allocation6 + $0x1], 0 }
   0x6   :  { %14 = vsyncpa [#allocation4], 0 }
   0x7   :  { %16 = vsyncpa [#allocation4 + $0x1], 0  ;;  %s821_s12 = smov 0   ;;  %s823_s13 = smov 0  }
   0x8   :  { %s825_s14 = smov 0   ;;  %s827_s15 = smov 0  }
   0x9 LB: > { %s842_s16 = sadd.s32 4294967295, %s792_s15   ;;  %s498_s17 = sadd.s32 4294967294, %s792_s15   ;;  %s792_s15 = sphi %s827_s15, %s1145_s15   ;;  %s788_s14 = sphi %s825_s14, %s1144_s14   ;;  %s784_s13 = sphi %s823_s13, %s1143_s13   ;;  %s780_s12 = sphi %s821_s12, %s1142_s12  }
   0xa   : > { %s846_s18 = sadd.s32 1, %s792_s15   ;;  %s29_s19 = sadd.s32 1, %s788_s14 }
   0xb   : > { %s26_s20 = ssub.s32 %s792_s15, %s846_s18  ;;  %p36_p0 = scmp.ne.s32.totalorder %s788_s14, %s784_s13 }
   0xc   : > { %p27_p1 = scmp.eq.s32.totalorder %s26_s20, 0  ;;  %p37_p2 = scmp.eq.s32.totalorder %s792_s15, 0 }
   0xd   : > { %p42_p3 = scmp.ne.s32.totalorder %s784_s13, %s780_s12  ;;  %p43_p4 = scmp.eq.s32.totalorder %s842_s16, 0 }
   0xe   : > { %s858_s21 = scalar_select %p27_p1, %s788_s14, %s29_s19  }
   0xf   : > { %p38_p5 = por %p37_p2, %p36_p0  ;;  %p860_p6 = por %p43_p4, %p42_p3 }
  0x10   : > { %1128 = sst [smem:[#allocation12_spill]] %s858_s21  ;;  %p118_p7 = scmp.eq.s32.totalorder %s842_s16, 5 }
  0x11   : > { %s1129_s22 = scalar_select %p860_p6, 1, 0 }
  0x12   : > { %p124_p8 = scmp.eq.s32.totalorder %s498_s17, 5  ;;  %p595_p9 = scmp.lt.s32.totalorder %s792_s15, 6 }
  0x13   : > { %p866_p10 = por %p118_p7, %p36_p0  ;;  %s875_s25 = sand.u32 1, %s788_s14  }
  0x14   : > { %p870_p11 = por %p124_p8, %p42_p3  ;;  %p877_p12 = pnand %p595_p9, %p38_p5 }
  0x15   : > { %s1130_s23 = scalar_select %p866_p10, 1, 0 }
  0x16   : > { %s1131_s24 = scalar_select %p870_p11, 1, 0 }
  0x17   : > { %s1132_s26 = scalar_select %p877_p12, 1, 0 }
  0x18   : > { %s163_s27 = sand.u32 1, %s792_s15   ;;  %s504_s28 = sshll.u32 %s875_s25, 6 }
  0x19   : > { %s570_s29 = sshll.u32 %s792_s15, 10  ;;  %s1133_s1 = sld [smem:[#allocation13_spill]] }
  0x1a   : > { %s167_s6 = scalar_lea.vmem [#allocation5], %s504_s28  ;;  %s895_s8 = scalar_lea.sflag [#allocation6], %s163_s27 }
  0x1b   : > { %s175_s7 = sshll.u32 %s167_s6, 4  ;;  %p901_p0 = pneg %p877_p12  ;;  %s893_s7 = int_to_ptr.vmem [resolvable:$true] %s175_s7 }
  0x1f   : > { %s889_s5 = scalar_lea.hbm %s1133_s1, %s570_s29  ;;  %s637_s19 = scalar_lea.hbm %s1133_s1, 6144 }
  0x20   : > { %s632_s9 = scalar_lea.hbm %s889_s5, 1024  ;;  %p638_p3 = scmp.lt.u32.totalorder %s889_s5, %s1133_s1 }
  0x21   : > { %p633_p13 = scmp.ne.s32.totalorder %s889_s5, %s632_s9  ;;  %p639_p4 = scmp.lt.u32.totalorder %s637_s19, %s632_s9 }
  0x22   : > { %p641_p7 = scmp.lt.u32.totalorder %s632_s9, %s889_s5 }
  0x23   : > { %p635_p1 = pnand %p901_p0, %p633_p13  ;;  %p640_p5 = por %p639_p4, %p638_p3 }
  0x25   : > { %p636_p2 = pneg %p635_p1  ;;  %p642_p8 = por %p641_p7, %p640_p5 }
  0x27   : > { %p643_p9 = pnand %p642_p8, %p636_p2 }
  0x29   : > { %646 = shalt.err (!%p643_p9)
}
  0x2a   : > { %s647_s27 = scalar_lea.vmem %s893_s7, 1024  ;;  %s794_s4 = smov [#allocation5]  }
  0x2b   : > { %p648_p13 = scmp.ne.s32.totalorder %s893_s7, %s647_s27  ;;  %s652_s6 = sshll.u32 %s794_s4, 4  ;;  %s653_s6 = int_to_ptr.vmem [resolvable:$false] %s652_s6 }
  0x2c   : > { %s654_s11 = scalar_lea.vmem %s653_s6, 2048  ;;  %p655_p10 = scmp.lt.s32.totalorder %s893_s7, %s653_s6 }
  0x2d   : > { %p650_p1 = pnand %p648_p13, %p901_p0  ;;  %p656_p6 = scmp.lt.s32.totalorder %s654_s11, %s647_s27 }
  0x2f   : > { %p651_p11 = pneg %p650_p1  ;;  %p657_p3 = por %p656_p6, %p655_p10 }
  0x31   : > { %p658_p4 = pnand %p657_p3, %p651_p11 }
  0x33   : > { %661 = shalt.err (!%p658_p4)
}
  0x34   : > { %587 = dma.hbm_to_vmem [thread:$0]  (!%p877_p12), %s889_s5, 1024, %s893_s7, %s895_s8  }
  0x35   : > { %s930_s19 = scalar_lea.hbm %s1122_s2, %s570_s29  ;;  %p510_p6 = scmp.ge.s32.totalorder %s792_s15, 1 }
  0x36   : > { %p199_p10 = scmp.lt.s32.totalorder %s792_s15, 7  ;;  %s501_s20 = sshll.u32 %s875_s25, 5 }
  0x37   : > { %s569_s30 = sshll.u32 %s792_s15, 9  ;;  %s148_s5 = scalar_lea.vmem [#allocation2], %s501_s20 }
  0x38   : > { %p936_p11 = pnand %p510_p6, %p199_p10  ;;  %s943_s11 = scalar_lea.hbm %s1120_s0, %s569_s30 }
  0x39   : > { %s156_s29 = sshll.u32 %s148_s5, 4  ;;  %s949_s7 = scalar_lea.vmem [#allocation7], %s504_s28  ;;  %s945_s29 = int_to_ptr.vmem [resolvable:$true] %s156_s29 }
  0x3a   : > { %s1135_s27 = scalar_select %p936_p11, 1, 0 }
  0x3b   : > { %s194_s9 = sshll.u32 %s949_s7, 4  ;;  %s145_s17 = scalar_lea.sflag [#allocation3], %s875_s25  ;;  %s195_s9 = int_to_ptr.vmem [resolvable:$true] %s194_s9 }
  0x3c   : > { %s662_s1 = scalar_lea.hbm %s943_s11, 512  ;;  %s667_s6 = scalar_lea.hbm %s1120_s0, 3072 }
  0x3d   : > { %p663_p2 = scmp.ne.s32.totalorder %s943_s11, %s662_s1  ;;  %p668_p8 = scmp.lt.u32.totalorder %s943_s11, %s1120_s0 }
  0x3e   : > { %p669_p9 = scmp.lt.u32.totalorder %s667_s6, %s662_s1  ;;  %p671_p1 = scmp.lt.u32.totalorder %s662_s1, %s943_s11 }
  0x3f   : > { %p665_p5 = pnand %p663_p2, %p901_p0 }
  0x40   : > { %p670_p13 = por %p669_p9, %p668_p8 }
  0x41   : > { %p666_p7 = pneg %p665_p5 }
  0x42   : > { %p672_p3 = por %p671_p1, %p670_p13 }
  0x44   : > { %p673_p4 = pnand %p672_p3, %p666_p7 }
  0x46   : > { %676 = shalt.err (!%p673_p4)
}
  0x47   : > { %s677_s25 = scalar_lea.vmem %s945_s29, 512  ;;  %s795_s28 = smov [#allocation2]  }
  0x48   : > { %p678_p6 = scmp.ne.s32.totalorder %s945_s29, %s677_s25  ;;  %s682_s5 = sshll.u32 %s795_s28, 4  ;;  %s683_s5 = int_to_ptr.vmem [resolvable:$false] %s682_s5 }
  0x49   : > { %s684_s21 = scalar_lea.vmem %s683_s5, 1024  ;;  %p685_p5 = scmp.lt.s32.totalorder %s945_s29, %s683_s5 }
  0x4a   : > { %p680_p10 = pnand %p678_p6, %p901_p0  ;;  %p686_p11 = scmp.lt.s32.totalorder %s684_s21, %s677_s25 }
  0x4c   : > { %p681_p2 = pneg %p680_p10  ;;  %p687_p8 = por %p686_p11, %p685_p5 }
  0x4e   : > { %p688_p9 = pnand %p687_p8, %p681_p2 }
  0x50   : > { %691 = shalt.err (!%p688_p9)
}
  0x51   : > { %584 = dma.hbm_to_vmem [thread:$0]  (!%p877_p12), %s943_s11, 512, %s945_s29, %s145_s17  }
  0x52   : > { %s692_s1 = scalar_lea.hbm %s930_s19, 1024  ;;  %s697_s6 = scalar_lea.hbm %s1122_s2, 6144 }
  0x53   : > { %p693_p7 = scmp.ne.s32.totalorder %s930_s19, %s692_s1  ;;  %p698_p1 = scmp.lt.u32.totalorder %s930_s19, %s1122_s2 }
  0x54   : > { %p699_p3 = scmp.lt.u32.totalorder %s697_s6, %s692_s1  ;;  %p701_p6 = scmp.lt.u32.totalorder %s692_s1, %s930_s19 }
  0x55   : > { %p695_p13 = pnand %p693_p7, %p901_p0 }
  0x56   : > { %p700_p4 = por %p699_p3, %p698_p1 }
  0x57   : > { %p696_p11 = pneg %p695_p13 }
  0x58   : > { %p702_p10 = por %p701_p6, %p700_p4 }
  0x5a   : > { %p703_p2 = pnand %p702_p10, %p696_p11 }
  0x5c   : > { %706 = shalt.err (!%p703_p2)
}
  0x5d   : > { %s707_s11 = scalar_lea.vmem %s195_s9, 1024  ;;  %s796_s29 = smov [#allocation7]  }
  0x5e   : > { %p708_p5 = scmp.ne.s32.totalorder %s195_s9, %s707_s11  ;;  %s712_s7 = sshll.u32 %s796_s29, 4  ;;  %s713_s7 = int_to_ptr.vmem [resolvable:$false] %s712_s7 }
  0x5f   : > { %s714_s17 = scalar_lea.vmem %s713_s7, 2048  ;;  %p715_p7 = scmp.lt.s32.totalorder %s195_s9, %s713_s7 }
  0x60   : > { %p710_p8 = pnand %p708_p5, %p901_p0  ;;  %p716_p13 = scmp.lt.s32.totalorder %s714_s17, %s707_s11 }
  0x62   : > { %p711_p9 = pneg %p710_p8  ;;  %p717_p12 = por %p716_p13, %p715_p7 }
  0x64   : > { %p718_p1 = pnand %p717_p12, %p711_p9 }
  0x66   : > { %721 = shalt.err (!%p718_p1)
}
  0x67   : > { %p1136_p3 = scmp.ne.s32.totalorder %s1132_s26, 0  ;;  %p1137_p11 = scmp.ne.s32.totalorder %s1135_s27, 0 }
  0x68   : > { %s997_s10 = sand.u32 (!%p1137_p11), 1, %s784_s13   ;;  %p1138_p12 = scmp.ne.s32.totalorder (!%p1137_p11), %s1129_s22, 0 }
  0x69   : > { %590 = dma.hbm_to_vmem [thread:$0]  (!%p1136_p3), %s930_s19, 1024, %s195_s9, %s895_s8  }
  0x6a   : > { %203 = sbr.rel (%p1137_p11) target bundleno = 159 (0x9f), region = 32  ;;  %s511_s28 = sshll.u32 (!%p1137_p11), %s997_s10, 5 }
  0x6b   : > { %s206_s5 = scalar_lea.sflag (!%p1137_p11), [#allocation3], %s997_s10  ;;  %s1001_s21 = scalar_lea.vmem (!%p1137_p11), [#allocation2], %s511_s28 }
  0x71   : > { %767 = dma.done.wait (%p1138_p12), %s206_s5, 512  }
  0x72   : > { %769 = vsyncadd (%p1138_p12), %s206_s5, 4294966784  ;;  %s214_s26 = sand.u32 1, %s842_s16   ;;  %s512_s8 = sshll.u32 %s997_s10, 6 }
  0x73   : > { %s215_s19 = scalar_lea.sflag [#allocation6], %s214_s26  ;;  %s1009_s27 = scalar_lea.vmem [#allocation5], %s512_s8 }
  0x74   : > { %771 = dma.done.wait (%p1138_p12), %s215_s19, 2048  }
  0x75   : > { %773 = vsyncadd (%p1138_p12), %s215_s19, 4294965248  ;;  %s514_s9 = sshll.u32 %s997_s10, 8  ;;  %s572_s1 = sshll.u32 %s842_s16, 11  ;;  %v518_v2 = vld [vmem:[%s1009_s27 + $0x3] ss:$4 sm:$0xff] }
  0x76   : > { %s1017_s30 = scalar_lea.vmem [#allocation8], %s514_s9  ;;  %s227_s6 = scalar_lea.vmem [#allocation7], %s512_s8  ;;  %v278_v5 = vmul.f32 %v518_v2, %v518_v2  ;;  %v519_v6 = vld [vmem:[%s1009_s27 + $0x23] ss:$4 sm:$0xff]  ;;  %v536_v14 = vld [vmem:[%s1009_s27 + $0x2] ss:$4 sm:$0xff] }
  0x77   : > { %s382_s4 = sshll.u32 %s1017_s30, 4  ;;  %v264_v0 = vld [vmem:[%s227_s6] ss:$4 sm:$0xff]  ;;  %v524_v7 = vld [vmem:[%s227_s6 + $0x2] ss:$4 sm:$0xff]  ;;  %v279_v9 = vmul.f32 %v519_v6, %v519_v6  ;;  %v314_v17 = vmul.f32 %v536_v14, %v536_v14  ;;  %s1055_s25 = scalar_lea.hbm %s1123_s3, %s572_s1  ;;  %s1059_s4 = int_to_ptr.vmem [resolvable:$true] %s382_s4 }
  0x78   : > { %v515_v1 = vld [vmem:[%s227_s6 + $0x20] ss:$4 sm:$0xff]  ;;  %v267_v3 = vmul.f32 %v264_v0, %v264_v0  ;;  %v525_v8 = vld [vmem:[%s227_s6 + $0x22] ss:$4 sm:$0xff]  ;;  %v290_v10 = vmul.f32 %v524_v7, %v524_v7  ;;  %v530_v12 = vld [vmem:[%s227_s6 + $0x1] ss:$4 sm:$0xff] }
  0x79   : > { %v268_v4 = vmul.f32 %v515_v1, %v515_v1  ;;  %v291_v11 = vmul.f32 %v525_v8, %v525_v8  ;;  %v531_v13 = vld [vmem:[%s227_s6 + $0x21] ss:$4 sm:$0xff]  ;;  %520 = vst [vmem:[%s1017_s30 + $0x1] ss:$8 sm:$0xf] %v278_v5  ;;  %v302_v15 = vmul.f32 %v530_v12, %v530_v12  ;;  %s369_s16 = scalar_lea.sflag [#allocation4], %s997_s10 }
  0x7a   : > { %269 = vst [vmem:[%s1017_s30] ss:$8 sm:$0xf] %v267_v3  ;;  %270 = vst [vmem:[%s1017_s30] ss:$8 sm:$0xf0] %v267_v3  ;;  %v303_v16 = vmul.f32 %v531_v13, %v531_v13  ;;  %v537_v18 = vld [vmem:[%s1009_s27 + $0x22] ss:$4 sm:$0xff] }
  0x7b   : > { %516 = vst [vmem:[%s1017_s30 + $0x40] ss:$8 sm:$0xf] %v268_v4  ;;  %517 = vst [vmem:[%s1017_s30 + $0x40] ss:$8 sm:$0xf0] %v268_v4  ;;  %v315_v21 = vmul.f32 %v537_v18, %v537_v18 }
  0x7c   : > { %521 = vst [vmem:[%s1017_s30 + $0x1] ss:$8 sm:$0xf0] %v278_v5  ;;  %v542_v19 = vld [vmem:[%s1001_s21 + $0x1] ss:$2 sm:$0xff]  ;;  %s722_s11 = scalar_lea.vmem %s1059_s4, 4096 }
  0x7d   : > { %v543_v20 = vld [vmem:[%s1001_s21 + $0x11] ss:$2 sm:$0xff]  ;;  %522 = vst [vmem:[%s1017_s30 + $0x41] ss:$8 sm:$0xf] %v279_v9  ;;  %v326_v22 = vmul.f32 %v542_v19, %v542_v19  ;;  %p723_p0 = scmp.ne.s32.totalorder %s1059_s4, %s722_s11  ;;  %p1139_p4 = scmp.ne.s32.totalorder %s1130_s23, 0 }
  0x7e   : > { %523 = vst [vmem:[%s1017_s30 + $0x41] ss:$8 sm:$0xf0] %v279_v9  ;;  %526 = vst [vmem:[%s1017_s30 + $0x2] ss:$8 sm:$0xf] %v290_v10  ;;  %v327_v23 = vmul.f32 %v543_v20, %v543_v20 }
  0x7f   : > { %527 = vst [vmem:[%s1017_s30 + $0x2] ss:$8 sm:$0xf0] %v290_v10  ;;  %528 = vst [vmem:[%s1017_s30 + $0x42] ss:$8 sm:$0xf] %v291_v11  ;;  %p724_p6 = pnand %p723_p0, %p1139_p4 }
  0x80   : > { %529 = vst [vmem:[%s1017_s30 + $0x42] ss:$8 sm:$0xf0] %v291_v11  ;;  %v334_v24 = vld [vmem:[%s1009_s27] ss:$4 sm:$0xff]  ;;  %s797_s29 = smov [#allocation8]  }
  0x81   : > { %v548_v25 = vld [vmem:[%s1009_s27 + $0x20] ss:$4 sm:$0xff]  ;;  %532 = vst [vmem:[%s1017_s30 + $0x3] ss:$8 sm:$0xf] %v302_v15  ;;  %v337_v27 = vmul.f32 %v334_v24, %v334_v24  ;;  %p725_p10 = pneg %p724_p6  ;;  %s726_s7 = sshll.u32 %s797_s29, 4  ;;  %s727_s7 = int_to_ptr.vmem [resolvable:$false] %s726_s7 }
  0x82   : > { %v345_v26 = vld [vmem:[%s1001_s21] ss:$2 sm:$0xff]  ;;  %533 = vst [vmem:[%s1017_s30 + $0x3] ss:$8 sm:$0xf0] %v302_v15  ;;  %v338_v28 = vmul.f32 %v548_v25, %v548_v25  ;;  %s728_s17 = scalar_lea.vmem %s727_s7, 8192  ;;  %p729_p2 = scmp.lt.s32.totalorder %s1059_s4, %s727_s7 }
  0x83   : > { %534 = vst [vmem:[%s1017_s30 + $0x43] ss:$8 sm:$0xf] %v303_v16  ;;  %535 = vst [vmem:[%s1017_s30 + $0x43] ss:$8 sm:$0xf0] %v303_v16  ;;  %v348_v29 = vmul.f32 %v345_v26, %v345_v26  ;;  %p730_p5 = scmp.lt.s32.totalorder %s728_s17, %s722_s11 }
  0x84   : > { %538 = vst [vmem:[%s1017_s30 + $0x4] ss:$8 sm:$0xf] %v314_v17  ;;  %539 = vst [vmem:[%s1017_s30 + $0x4] ss:$8 sm:$0xf0] %v314_v17 }
  0x85   : > { %v553_v30 = vld [vmem:[%s1001_s21 + $0x10] ss:$2 sm:$0xff]  ;;  %v558_v31 = vld [vmem:[%s1009_s27 + $0x1] ss:$4 sm:$0xff]  ;;  %p731_p8 = por %p730_p5, %p729_p2 }
  0x86   : > { %v559_v32 = vld [vmem:[%s1009_s27 + $0x21] ss:$4 sm:$0xff]  ;;  %540 = vst [vmem:[%s1017_s30 + $0x44] ss:$8 sm:$0xf] %v315_v21  ;;  %v349_v33 = vmul.f32 %v553_v30, %v553_v30  ;;  %v360_v34 = vmul.f32 %v558_v31, %v558_v31 }
  0x87   : > { %541 = vst [vmem:[%s1017_s30 + $0x44] ss:$8 sm:$0xf0] %v315_v21  ;;  %544 = vst [vmem:[%s1017_s30 + $0x5] ss:$8 sm:$0xf] %v326_v22  ;;  %v361_v35 = vmul.f32 %v559_v32, %v559_v32  ;;  %p732_p9 = pnand %p731_p8, %p725_p10 }
  0x88   : > { %545 = vst [vmem:[%s1017_s30 + $0x5] ss:$8 sm:$0xf0] %v326_v22  ;;  %546 = vst [vmem:[%s1017_s30 + $0x45] ss:$8 sm:$0xf] %v327_v23 }
  0x89   : > { %547 = vst [vmem:[%s1017_s30 + $0x45] ss:$8 sm:$0xf0] %v327_v23  ;;  %549 = vst [vmem:[%s1017_s30 + $0x6] ss:$8 sm:$0xf] %v337_v27 }
  0x8a   : > { %550 = vst [vmem:[%s1017_s30 + $0x6] ss:$8 sm:$0xf0] %v337_v27  ;;  %551 = vst [vmem:[%s1017_s30 + $0x46] ss:$8 sm:$0xf] %v338_v28 }
  0x8b   : > { %552 = vst [vmem:[%s1017_s30 + $0x46] ss:$8 sm:$0xf0] %v338_v28  ;;  %554 = vst [vmem:[%s1017_s30 + $0x7] ss:$8 sm:$0xf] %v348_v29 }
  0x8c   : > { %555 = vst [vmem:[%s1017_s30 + $0x7] ss:$8 sm:$0xf0] %v348_v29  ;;  %556 = vst [vmem:[%s1017_s30 + $0x47] ss:$8 sm:$0xf] %v349_v33 }
  0x8d   : > { %557 = vst [vmem:[%s1017_s30 + $0x47] ss:$8 sm:$0xf0] %v349_v33  ;;  %560 = vst [vmem:[%s1017_s30 + $0x80] ss:$8 sm:$0xf] %v360_v34 }
  0x8e   : > { %561 = vst [vmem:[%s1017_s30 + $0x80] ss:$8 sm:$0xf0] %v360_v34  ;;  %562 = vst [vmem:[%s1017_s30 + $0xc0] ss:$8 sm:$0xf] %v361_v35 }
  0x8f   : > { %563 = vst [vmem:[%s1017_s30 + $0xc0] ss:$8 sm:$0xf0] %v361_v35 }
  0x90   : > { %735 = shalt.err (!%p732_p9)
}
  0x91   : > { %s736_s28 = scalar_lea.hbm %s1055_s25, 4096  ;;  %s740_s26 = scalar_lea.hbm %s1123_s3, 24576 }
  0x92   : > { %p737_p7 = scmp.ne.s32.totalorder %s1055_s25, %s736_s28  ;;  %p741_p3 = scmp.lt.u32.totalorder %s1055_s25, %s1123_s3 }
  0x93   : > { %p742_p11 = scmp.lt.u32.totalorder %s740_s26, %s736_s28  ;;  %p744_p0 = scmp.lt.u32.totalorder %s736_s28, %s1055_s25 }
  0x94   : > { %p738_p13 = pnand %p737_p7, %p1139_p4 }
  0x95   : > { %p743_p12 = por %p742_p11, %p741_p3 }
  0x96   : > { %p739_p1 = pneg %p738_p13 }
  0x97   : > { %p745_p6 = por %p744_p0, %p743_p12 }
  0x99   : > { %p746_p10 = pnand %p745_p6, %p739_p1 }
  0x9b   : > { %749 = shalt.err (!%p746_p10)
}
  0x9c   : > { %s798_s27 = smov 2048   ;;  %s799_s9 = smov 12288  }
  0x9d   : > { %s800_s1 = smov 128  }
  0x9e   : > { %579 = dma.vmem_to_hbm [thread:$0]  (%p1139_p4), %s1059_s4, 4096, %s1055_s25, %s369_s16, %s798_s27, %s799_s9, %s800_s1  }
  0x9f PF: > { %p596_p2 = scmp.ge.s32.totalorder %s792_s15, 2  ;;  %s397_s30 = sand.u32 1, %s780_s12  }
  0xa0   : > { %p1140_p5 = scmp.ne.s32.totalorder %s1131_s24, 0  ;;  %s398_s6 = scalar_lea.sflag [#allocation4], %s397_s30 }
  0xa2   : > { %p592_p8 = pnand %p596_p2, %p1140_p5 }
  0xa4   : > { %775 = dma.done.wait (!%p592_p8), %s398_s6, 4096  }
  0xa5   : > { %777 = vsyncadd (!%p592_p8), %s398_s6, 4294963200  ;;  %s1141_s22 = sld [smem:[#allocation12_spill]]  ;;  %p19_p9 = scmp.ge.s32.totalorder %s846_s18, 8  }
  0xa6   : > { %s1142_s12 = smov %s784_s13  ;;  %s1143_s13 = smov %s788_s14 }
  0xa7   : > { %s1145_s15 = smov %s846_s18  ;;  %21 = sbr.rel (!%p19_p9) target bundleno = 9 (0x9), region = 133 }
  0xab   : > { %s1144_s14 = smov %s1141_s22 }
  0xae   :  { %403 = vsyncpa [#allocation3], 1 }
  0xaf   :  { %405 = vsyncpa [#allocation3 + $0x1], 1 }
  0xb0   :  { %406 = vsyncpa [#allocation6], 1 }
  0xb1   :  { %408 = vsyncpa [#allocation6 + $0x1], 1 }
  0xb2   :  { %409 = vsyncpa [#allocation4], 1 }
  0xb3   :  { %411 = vsyncpa [#allocation4 + $0x1], 1 }

</bundles_post_ra>
